<compile_context>
chip_gen: v6e
topology: v6e:2x2x1
jax: 0.10.0
libtpu: 0.0.40
codegen_flags: <defaults>
</compile_context>

<pallas_src>
import functools

import jax
import jax.numpy as jnp
from jax.experimental import pallas as pl
from jax.experimental.pallas import tpu as pltpu

# ------------------------- configuration (small synthetic shapes) -------------------------
BATCH = 8            # batch size (K_QUEUE % BATCH == 0, as MoCo asserts)
CIN = 4              # input image channels
SPATIAL = 16         # H = W
DIM_MLP = 32         # encoder.out_channels
DIM = 32             # MoCo feature dim
K_QUEUE = 128        # queue size
M_MOMENTUM = 0.999   # key-encoder momentum
T_TEMP = 0.07        # softmax temperature

KDIM = 9 * CIN                 # 36: im2col contraction dim, native width (no 128 padding)
PIX = SPATIAL * SPATIAL        # 256: pixels per image = one conv chunk
CMAX = max(DIM_MLP, DIM)       # lane width of the packed weight slab


def _align8(x):
    return ((x + 7) // 8) * 8


# 8-aligned row offsets inside the packed per-encoder weight slab.
R_CONV = 0
R_W1 = _align8(R_CONV + KDIM)
R_W2 = _align8(R_W1 + DIM_MLP)
R_B1 = _align8(R_W2 + DIM_MLP)
R_B2 = _align8(R_B1 + 1)
W_ROWS = _align8(R_B2 + 1)

# lane-dense output slab: [0:K_QUEUE) = feat @ queue / T, [K_QUEUE:K_QUEUE+DIM) = feature
SLAB_W = ((K_QUEUE + DIM + 127) // 128) * 128


def _vmem():
    return pl.BlockSpec(memory_space=pltpu.MemorySpace.VMEM)


# ------------------------------------- Pallas kernels -------------------------------------

def _moco_branch_kernel(p_ref, w_ref, queue_ref, out_ref, feats_ref, *, inv_t, n_img, pix):
    """One grid step = one encoder branch (step 0: query, step 1: key).

    conv3x3 (per-image chunked im2col matmul) -> ReLU -> global average pool
    -> Linear -> ReLU -> Linear -> L2 normalize -> (feat @ queue) / T.
    """
    # ---- encoder: per-image chunks so the f32 conv intermediate never spills ----
    cw = w_ref[R_CONV:R_CONV + KDIM, :DIM_MLP]                 # (36, 32) bf16, loaded once
    inv_p = 1.0 / float(pix)

    @pl.loop(0, n_img)
    def _(i):
        r0 = pl.multiple_of(i * pix, pix)
        conv = jnp.dot(p_ref[pl.ds(r0, pix), :], cw,
                       preferred_element_type=jnp.float32)      # (pix, DIM_MLP) f32 accum
        conv = jnp.maximum(conv, 0.0)                            # ReLU in f32 (v5e-safe)
        # global average pool for image i: sublane reduce (VPU/XLU), not an MXU matmul
        feats_ref[pl.ds(i, 1), :] = jnp.sum(conv, axis=0, keepdims=True) * inv_p

    feats = feats_ref[...]                                       # (N, DIM_MLP) f32

    # ---- MLP head: Linear -> ReLU -> Linear, then L2 normalize (rsqrt on the EUP) ----
    w1 = w_ref[R_W1:R_W1 + DIM_MLP, :DIM_MLP]
    w2 = w_ref[R_W2:R_W2 + DIM_MLP, :DIM]
    b1 = w_ref[R_B1:R_B1 + 1, :DIM_MLP].astype(jnp.float32)
    b2 = w_ref[R_B2:R_B2 + 1, :DIM].astype(jnp.float32)
    h = jnp.maximum(jnp.dot(feats.astype(jnp.bfloat16), w1,
                            preferred_element_type=jnp.float32) + b1, 0.0)
    z = jnp.dot(h.astype(jnp.bfloat16), w2,
                preferred_element_type=jnp.float32) + b2
    # clamp matches F.normalize's eps=1e-12 on the norm
    inv_norm = jax.lax.rsqrt(jnp.maximum(jnp.sum(z * z, axis=1, keepdims=True), 1e-24))
    z = z * inv_norm                                             # (N, DIM) f32, unit rows

    # ---- logits vs the queue; only step 0's block [:, :K] is consumed (q @ queue), but
    #      computing it on both branches keeps the parallel steps identical and the store a
    #      single unmasked 256-lane-wide vst. l_pos / concat happen in XLA on the f32 feats.
    neg = jnp.dot(z.astype(jnp.bfloat16), queue_ref[...],
                  preferred_element_type=jnp.float32) * inv_t    # (N, K_QUEUE) f32
    parts = [neg, z]
    pad_w = SLAB_W - K_QUEUE - DIM
    if pad_w:
        parts.append(jnp.zeros((n_img, pad_w), jnp.float32))
    out_ref[...] = jnp.concatenate(parts, axis=1)                # one lane-dense store


def _encoder_only_kernel(p_ref, cw_ref, o_ref, *, n_img, pix):
    """Feature-only path (im_k is None): conv3x3 -> ReLU -> global average pool."""
    cw = cw_ref[...]
    inv_p = 1.0 / float(pix)

    @pl.loop(0, n_img)
    def _(i):
        r0 = pl.multiple_of(i * pix, pix)
        conv = jnp.maximum(jnp.dot(p_ref[pl.ds(r0, pix), :], cw,
                                   preferred_element_type=jnp.float32), 0.0)
        o_ref[pl.ds(i, 1), :] = jnp.sum(conv, axis=0, keepdims=True) * inv_p


# ------------------------------------- wrappers -------------------------------------

def _im2col(x_nchw):
    """NCHW image -> (N*H*W, 9*Cin) bf16 im2col rows for a 3x3/pad=1 conv (native width)."""
    n, c, h, w = x_nchw.shape
    x = jnp.transpose(x_nchw, (0, 2, 3, 1))                       # NCHW -> NHWC
    xp = jnp.pad(x, ((0, 0), (1, 1), (1, 1), (0, 0)))
    taps = [xp[:, dy:dy + h, dx:dx + w, :] for dy in range(3) for dx in range(3)]
    patches = jnp.stack(taps, axis=3).reshape(n * h * w, 9 * c)   # (N*P, 9*Cin)
    return patches.astype(jnp.bfloat16)


def _pack_params(p):
    """Pack conv_w / w1 / b1 / w2 / b2 of one encoder into a (W_ROWS, CMAX) bf16 slab."""
    slab = jnp.zeros((W_ROWS, CMAX), jnp.float32)
    slab = slab.at[R_CONV:R_CONV + KDIM, :DIM_MLP].set(p["conv_w"].reshape(KDIM, DIM_MLP))
    slab = slab.at[R_W1:R_W1 + DIM_MLP, :DIM_MLP].set(p["w1"])
    slab = slab.at[R_W2:R_W2 + DIM_MLP, :DIM].set(p["w2"])
    slab = slab.at[R_B1, :DIM_MLP].set(p["b1"])
    slab = slab.at[R_B2, :DIM].set(p["b2"])
    return slab.astype(jnp.bfloat16)


def encoder_forward(im, conv_w):
    """Synthetic base_encoder forward (feature-only path). Returns (N, dim_mlp) f32."""
    n, _, h, w = im.shape
    kernel = functools.partial(_encoder_only_kernel, n_img=n, pix=h * w)
    return pl.pallas_call(
        kernel,
        out_shape=jax.ShapeDtypeStruct((n, conv_w.shape[-1]), jnp.float32),
        in_specs=[_vmem(), _vmem()],
        out_specs=_vmem(),
    )(_im2col(im), conv_w.reshape(-1, conv_w.shape[-1]).astype(jnp.bfloat16))


def moco_forward(params_q, params_k, queue, queue_ptr, im_q, im_k=None):
    """Mirrors MoCo.forward. Returns (logits, labels, new_params_k, new_queue, new_ptr)."""
    if im_k is None:
        return encoder_forward(im_q, params_q["conv_w"])

    n, _, h, w = im_q.shape
    pix = h * w

    # ---- momentum update of the key encoder (tiny glue, before the key forward) ----
    params_k = jax.tree_util.tree_map(
        lambda pk, pq: M_MOMENTUM * pk + (1.0 - M_MOMENTUM) * pq, params_k, params_q)

    # ---- consolidated kernel inputs: 3 DMAs instead of 14 ----
    patches = jnp.stack([_im2col(im_q), _im2col(im_k)], axis=0)          # (2, N*P, 36) bf16
    wslab = jnp.stack([_pack_params(params_q), _pack_params(params_k)])  # (2, 120, 32) bf16

    kernel = functools.partial(_moco_branch_kernel,
                               inv_t=1.0 / float(T_TEMP), n_img=n, pix=pix)
    out = pl.pallas_call(
        kernel,
        out_shape=jax.ShapeDtypeStruct((2, n, SLAB_W), jnp.float32),
        grid_spec=pltpu.PrefetchScalarGridSpec(
            num_scalar_prefetch=0,
            grid=(2,),                                   # step 0: query branch, 1: key branch
            in_specs=[
                pl.BlockSpec((None, n * pix, KDIM), lambda s: (s, 0, 0)),
                pl.BlockSpec((None, W_ROWS, CMAX), lambda s: (s, 0, 0)),
                pl.BlockSpec((DIM, K_QUEUE), lambda s: (0, 0)),
            ],
            out_specs=pl.BlockSpec((None, n, SLAB_W), lambda s: (s, 0, 0)),
            scratch_shapes=[pltpu.VMEM((n, DIM_MLP), jnp.float32)],
        ),
        compiler_params=pltpu.CompilerParams(
            dimension_semantics=("parallel",)),          # q/k branches -> both TCs on v7x
    )(patches, wslab, queue.astype(jnp.bfloat16))

    # ---- tiny f32 epilogue in XLA ----
    l_neg = out[0, :, :K_QUEUE]                                   # q @ queue / T (pre-enqueue)
    q = out[0, :, K_QUEUE:K_QUEUE + DIM]
    k = out[1, :, K_QUEUE:K_QUEUE + DIM]
    l_pos = jnp.sum(q * k, axis=1, keepdims=True) * (1.0 / T_TEMP)
    logits = jnp.concatenate([l_pos, l_neg], axis=1)              # (N, 1+K)
    labels = jnp.zeros((n,), dtype=jnp.int32)

    # ---- dequeue and enqueue (functional update of the buffers) ----
    ptr = queue_ptr[0]
    new_queue = jax.lax.dynamic_update_slice(queue, k.T, (jnp.int32(0), ptr))
    new_ptr = jnp.reshape((ptr + n) % K_QUEUE, (1,)).astype(jnp.int32)

    return logits, labels, params_k, new_queue, new_ptr


# ------------------------------------- init / main -------------------------------------

def init_encoder_params(key):
    k1, k2, k3, k4, k5 = jax.random.split(key, 5)
    s_conv = 1.0 / jnp.sqrt(9.0 * CIN)
    s_fc1 = 1.0 / jnp.sqrt(float(DIM_MLP))
    return {
        "conv_w": jax.random.uniform(k1, (3, 3, CIN, DIM_MLP), jnp.float32, -s_conv, s_conv),
        "w1": jax.random.uniform(k2, (DIM_MLP, DIM_MLP), jnp.float32, -s_fc1, s_fc1),
        "b1": jax.random.uniform(k3, (DIM_MLP,), jnp.float32, -s_fc1, s_fc1),
        "w2": jax.random.uniform(k4, (DIM_MLP, DIM), jnp.float32, -s_fc1, s_fc1),
        "b2": jax.random.uniform(k5, (DIM,), jnp.float32, -s_fc1, s_fc1),
    }


if __name__ == "__main__":
    root = jax.random.PRNGKey(0)
    k_params, k_queue, k_imq, k_imk = jax.random.split(root, 4)

    params_q = init_encoder_params(k_params)
    # key encoder is initialized as a copy of the query encoder (param_k.copy_(param_q))
    params_k = jax.tree_util.tree_map(lambda p: p, params_q)

    queue = jax.random.normal(k_queue, (DIM, K_QUEUE), jnp.float32)
    queue = queue / jnp.linalg.norm(queue, axis=0, keepdims=True)   # normalize(dim=0)
    queue_ptr = jnp.zeros((1,), dtype=jnp.int32)

    im_q = jax.random.normal(k_imq, (BATCH, CIN, SPATIAL, SPATIAL), jnp.float32)
    im_k = jax.random.normal(k_imk, (BATCH, CIN, SPATIAL, SPATIAL), jnp.float32)

    # full contrastive path
    logits, labels, new_params_k, new_queue, new_ptr = jax.block_until_ready(
        jax.jit(moco_forward)(params_q, params_k, queue, queue_ptr, im_q, im_k))

    # feature-only path (im_k is None)
    feats = jax.block_until_ready(jax.jit(encoder_forward)(im_q, params_q["conv_w"]))

    # sanity checks on kernel outputs
    assert logits.shape == (BATCH, 1 + K_QUEUE)
    assert labels.shape == (BATCH,) and labels.dtype == jnp.int32
    assert bool(jnp.all(jnp.isfinite(logits)))
    # l_pos = q.k with unit-norm q, k, divided by T  =>  |l_pos| <= 1/T (+ eps)
    assert bool(jnp.all(jnp.abs(logits[:, 0]) <= 1.0 / T_TEMP + 1e-3))
    # enqueued keys are unit-norm columns of the new queue
    col_norms = jnp.linalg.norm(new_queue[:, :BATCH], axis=0)
    assert bool(jnp.all(jnp.abs(col_norms - 1.0) < 1e-3))
    assert int(new_ptr[0]) == BATCH % K_QUEUE
    assert feats.shape == (BATCH, DIM_MLP) and bool(jnp.all(jnp.isfinite(feats)))

    print("KERNEL_OK")
</pallas_src>

<mosaic_0001>
module attributes {stable_mosaic.version = 11 : i64} {
  func.func @_moco_branch_kernel(%arg0: i32, %arg1: memref<1x2048x36xbf16, #tpu.memory_space<vmem>>, %arg2: memref<1x120x32xbf16, #tpu.memory_space<vmem>>, %arg3: memref<32x128xbf16, #tpu.memory_space<vmem>>, %arg4: memref<1x8x256xf32, #tpu.memory_space<vmem>>, %arg5: memref<8x32xf32, #tpu.memory_space<vmem>>) attributes {dimension_semantics = [#tpu.dimension_semantics<parallel>], iteration_bounds = array<i64: 2>, scalar_prefetch = 0 : i64, scratch_operands = 1 : i64, tpu.core_type = #tpu.core_type<tc>, window_params = [{transform_indices = @transform_0, window_bounds = array<i64: 1, 2048, 36>}, {transform_indices = @transform_1, window_bounds = array<i64: 1, 120, 32>}, {pipeline_mode = #tpu.pipeline_mode<synchronous>, transform_indices = @transform_2, window_bounds = array<i64: 32, 128>}, {transform_indices = @transform_3, window_bounds = array<i64: 1, 8, 256>}]} {
    %c0 = arith.constant 0 : index
    %c0_0 = arith.constant 0 : index
    %c0_1 = arith.constant 0 : index
    %0 = vector.load %arg2[%c0, %c0_0, %c0_1] : memref<1x120x32xbf16, #tpu.memory_space<vmem>>, vector<1x36x32xbf16>
    %1 = vector.shape_cast %0 : vector<1x36x32xbf16> to vector<36x32xbf16>
    %c0_i32 = arith.constant 0 : i32
    %c8_i32 = arith.constant 8 : i32
    %2 = arith.addi %c0_i32, %c8_i32 : i32
    %c1_i32 = arith.constant 1 : i32
    scf.for %arg6 = %c0_i32 to %2 step %c1_i32  : i32 {
      %c1_i32_25 = arith.constant 1 : i32
      %42 = arith.muli %arg6, %c1_i32_25 : i32
      %c0_i32_26 = arith.constant 0 : i32
      %43 = arith.addi %c0_i32_26, %42 : i32
      %c256_i32 = arith.constant 256 : i32
      %44 = arith.muli %43, %c256_i32 : i32
      %45 = tpu.assume_multiple %44, 256 : i32
      %c0_27 = arith.constant 0 : index
      %46 = arith.index_cast %45 : i32 to index
      %c0_28 = arith.constant 0 : index
      %47 = vector.load %arg1[%c0_27, %46, %c0_28] : memref<1x2048x36xbf16, #tpu.memory_space<vmem>>, vector<1x256x36xbf16>
      %48 = vector.shape_cast %47 : vector<1x256x36xbf16> to vector<256x36xbf16>
      %cst_29 = arith.constant dense<0.000000e+00> : vector<256x32xf32>
      %49 = tpu.matmul %48, %1, %cst_29 {dimension_numbers = #tpu.dot_dimension_numbers<[1], [0], [0], [1], [0, 0, 1, 1], [], []>} : vector<256x36xbf16>, vector<36x32xbf16>, vector<256x32xf32> -> vector<256x32xf32>
      %cst_30 = arith.constant 0.000000e+00 : f32
      %50 = vector.broadcast %cst_30 : f32 to vector<256x32xf32>
      %51 = arith.maximumf %49, %50 : vector<256x32xf32>
      %cst_31 = arith.constant dense<0.000000e+00> : vector<32xf32>
      %52 = vector.multi_reduction <add>, %51, %cst_31 [0] : vector<256x32xf32> to vector<32xf32>
      %53 = vector.shape_cast %52 : vector<32xf32> to vector<1x32xf32>
      %cst_32 = arith.constant 3.906250e-03 : f32
      %54 = vector.broadcast %cst_32 : f32 to vector<1x32xf32>
      %55 = arith.mulf %53, %54 : vector<1x32xf32>
      %56 = arith.index_cast %43 : i32 to index
      %c0_33 = arith.constant 0 : index
      %57 = vector.load %arg5[%56, %c0_33] : memref<8x32xf32, #tpu.memory_space<vmem>>, vector<1x32xf32>
      tpu.vector_store %arg5[%56, %c0_33], %55 {strides = array<i32>} : memref<8x32xf32, #tpu.memory_space<vmem>>, vector<1x32xf32>,
    }
    %c8_i32_2 = arith.constant 8 : i32
    %c0_3 = arith.constant 0 : index
    %c0_4 = arith.constant 0 : index
    %3 = vector.load %arg5[%c0_3, %c0_4] : memref<8x32xf32, #tpu.memory_space<vmem>>, vector<8x32xf32>
    %c0_5 = arith.constant 0 : index
    %c40 = arith.constant 40 : index
    %c0_6 = arith.constant 0 : index
    %4 = vector.load %arg2[%c0_5, %c40, %c0_6] : memref<1x120x32xbf16, #tpu.memory_space<vmem>>, vector<1x32x32xbf16>
    %5 = vector.shape_cast %4 : vector<1x32x32xbf16> to vector<32x32xbf16>
    %c0_7 = arith.constant 0 : index
    %c72 = arith.constant 72 : index
    %c0_8 = arith.constant 0 : index
    %6 = vector.load %arg2[%c0_7, %c72, %c0_8] : memref<1x120x32xbf16, #tpu.memory_space<vmem>>, vector<1x32x32xbf16>
    %7 = vector.shape_cast %6 : vector<1x32x32xbf16> to vector<32x32xbf16>
    %c0_9 = arith.constant 0 : index
    %c104 = arith.constant 104 : index
    %c0_10 = arith.constant 0 : index
    %8 = vector.load %arg2[%c0_9, %c104, %c0_10] : memref<1x120x32xbf16, #tpu.memory_space<vmem>>, vector<1x1x32xbf16>
    %9 = vector.shape_cast %8 : vector<1x1x32xbf16> to vector<1x32xbf16>
    %10 = arith.extf %9 : vector<1x32xbf16> to vector<1x32xf32>
    %c0_11 = arith.constant 0 : index
    %c112 = arith.constant 112 : index
    %c0_12 = arith.constant 0 : index
    %11 = vector.load %arg2[%c0_11, %c112, %c0_12] : memref<1x120x32xbf16, #tpu.memory_space<vmem>>, vector<1x1x32xbf16>
    %12 = vector.shape_cast %11 : vector<1x1x32xbf16> to vector<1x32xbf16>
    %13 = arith.extf %12 : vector<1x32xbf16> to vector<1x32xf32>
    %14 = arith.truncf %3 : vector<8x32xf32> to vector<8x32xbf16>
    %cst = arith.constant dense<0.000000e+00> : vector<8x32xf32>
    %15 = tpu.matmul %14, %5, %cst {dimension_numbers = #tpu.dot_dimension_numbers<[1], [0], [0], [1], [0, 0, 1, 1], [], []>} : vector<8x32xbf16>, vector<32x32xbf16>, vector<8x32xf32> -> vector<8x32xf32>
    %16 = vector.broadcast %10 : vector<1x32xf32> to vector<8x32xf32>
    %17 = arith.addf %15, %16 : vector<8x32xf32>
    %cst_13 = arith.constant 0.000000e+00 : f32
    %18 = vector.broadcast %cst_13 : f32 to vector<8x32xf32>
    %19 = arith.maximumf %17, %18 : vector<8x32xf32>
    %20 = arith.truncf %19 : vector<8x32xf32> to vector<8x32xbf16>
    %cst_14 = arith.constant dense<0.000000e+00> : vector<8x32xf32>
    %21 = tpu.matmul %20, %7, %cst_14 {dimension_numbers = #tpu.dot_dimension_numbers<[1], [0], [0], [1], [0, 0, 1, 1], [], []>} : vector<8x32xbf16>, vector<32x32xbf16>, vector<8x32xf32> -> vector<8x32xf32>
    %22 = vector.broadcast %13 : vector<1x32xf32> to vector<8x32xf32>
    %23 = arith.addf %21, %22 : vector<8x32xf32>
    %24 = arith.mulf %23, %23 : vector<8x32xf32>
    %cst_15 = arith.constant dense<0.000000e+00> : vector<8xf32>
    %25 = vector.multi_reduction <add>, %24, %cst_15 [1] : vector<8x32xf32> to vector<8xf32>
    %26 = vector.shape_cast %25 : vector<8xf32> to vector<8x1xf32>
    %cst_16 = arith.constant 1.000000e-24 : f32
    %27 = vector.broadcast %cst_16 : f32 to vector<8x1xf32>
    %28 = arith.maximumf %26, %27 : vector<8x1xf32>
    %29 = math.rsqrt %28 : vector<8x1xf32>
    %30 = vector.broadcast %29 : vector<8x1xf32> to vector<8x32xf32>
    %31 = arith.mulf %23, %30 : vector<8x32xf32>
    %32 = arith.truncf %31 : vector<8x32xf32> to vector<8x32xbf16>
    %c0_17 = arith.constant 0 : index
    %c0_18 = arith.constant 0 : index
    %33 = vector.load %arg3[%c0_17, %c0_18] : memref<32x128xbf16, #tpu.memory_space<vmem>>, vector<32x128xbf16>
    %cst_19 = arith.constant dense<0.000000e+00> : vector<8x128xf32>
    %34 = tpu.matmul %32, %33, %cst_19 {dimension_numbers = #tpu.dot_dimension_numbers<[1], [0], [0], [1], [0, 0, 1, 1], [], []>} : vector<8x32xbf16>, vector<32x128xbf16>, vector<8x128xf32> -> vector<8x128xf32>
    %cst_20 = arith.constant 14.2857141 : f32
    %35 = vector.broadcast %cst_20 : f32 to vector<8x128xf32>
    %36 = arith.mulf %34, %35 : vector<8x128xf32>
    %cst_21 = arith.constant 0.000000e+00 : f32
    %37 = vector.broadcast %cst_21 : f32 to vector<8x96xf32>
    %38 = tpu.concatenate %36, %31, %37 in 1 : vector<8x128xf32>, vector<8x32xf32>, vector<8x96xf32> -> vector<8x256xf32>
    %c0_22 = arith.constant 0 : index
    %c0_23 = arith.constant 0 : index
    %c0_24 = arith.constant 0 : index
    %39 = vector.load %arg4[%c0_22, %c0_23, %c0_24] : memref<1x8x256xf32, #tpu.memory_space<vmem>>, vector<1x8x256xf32>
    %40 = vector.shape_cast %39 : vector<1x8x256xf32> to vector<8x256xf32>
    %41 = vector.shape_cast %38 : vector<8x256xf32> to vector<1x8x256xf32>
    tpu.vector_store %arg4[%c0_22, %c0_23, %c0_24], %41 {strides = array<i32>} : memref<1x8x256xf32, #tpu.memory_space<vmem>>, vector<1x8x256xf32>,
    return
  }
  func.func @transform_0(%arg0: i32) -> (i32, i32, i32) {
    %c0_i32 = arith.constant 0 : i32
    %c0_i32_0 = arith.constant 0 : i32
    %c0_i32_1 = arith.constant 0 : i32
    return %arg0, %c0_i32, %c0_i32_0 : i32, i32, i32
  }
  func.func @transform_1(%arg0: i32) -> (i32, i32, i32) {
    %c0_i32 = arith.constant 0 : i32
    %c0_i32_0 = arith.constant 0 : i32
    %c0_i32_1 = arith.constant 0 : i32
    return %arg0, %c0_i32, %c0_i32_0 : i32, i32, i32
  }
  func.func @transform_2(%arg0: i32) -> (i32, i32) {
    %c0_i32 = arith.constant 0 : i32
    %c0_i32_0 = arith.constant 0 : i32
    %c0_i32_1 = arith.constant 0 : i32
    return %c0_i32, %c0_i32_0 : i32, i32
  }
  func.func @transform_3(%arg0: i32) -> (i32, i32, i32) {
    %c0_i32 = arith.constant 0 : i32
    %c0_i32_0 = arith.constant 0 : i32
    %c0_i32_1 = arith.constant 0 : i32
    return %arg0, %c0_i32, %c0_i32_0 : i32, i32, i32
  }
}

</mosaic_0001>

<bundles_post_ra>
// kernel: moco_forward.1
= control target key start
LH: loop header
LB: loop body
LE: loop exit
PB: predicated region body
PF: predicated region fallthrough
CT: control target
= control target key end

     0   :  { %s1175_s12 = smov 0   ;;  %s1333_s0 = inlined_call_operand.vmem [shape: bf16[2,2048,36], index: 0, kind: input, shape index: {}]   ;;  %s1334_s1 = inlined_call_operand.vmem [shape: bf16[2,120,32], index: 1, kind: input, shape index: {}]   ;;  %s1335_s2 = inlined_call_operand.vmem [shape: bf16[32,128], index: 2, kind: input, shape index: {}]   ;;  %s1336_s3 = inlined_call_operand.vmem [shape: f32[2,8,256], index: 3, kind: output, shape index: {}]  }
   0x1 LB: > { %s936_s13 = sadd.s32 4294967295, %s1147_s12   ;;  %p940_p0 = scmp.ge.s32.totalorder %s1147_s12, 1  ;;  %s1147_s12 = sphi %s1175_s12, %s13_s12  }
   0x2   : > { %p147_p1 = scmp.lt.s32.totalorder %s1147_s12, 3 }
   0x4   : > { %p148_p2 = pnand %p940_p0, %p147_p1 }
   0x5   : > { %p176_p3 = scmp.lt.s32.totalorder (!%p148_p2), %s936_s13, 1  ;;  %s1213_s26 = smov (!%p148_p2), 0  }
   0x6   : > { %151 = sbr.rel (%p148_p2) target bundleno = 1073 (0x431), region = 32 }
   0xb   : > { %s1338_s13 = smov (!%p176_p3, %s936_s13), 1 }
   0xc   : > { %s994_s14 = sshll.u32 %s1338_s13, 10  ;;  %s1094_s15 = smul.u32 60, %s1338_s13 }
   0xd   : > { %s1186_s18 = scalar_lea.vmem %s1333_s0, %s994_s14  ;;  %s995_s19 = sshll.u32 %s1338_s13, 4 }
   0xe   : > { %s1191_s22 = scalar_lea.vmem %s1334_s1, %s1094_s15  ;;  %s1196_s25 = scalar_lea.vmem %s1336_s3, %s995_s19 }
   0xf   : > { %v1199_v0 = vld [vmem:[%s1191_s22] sm:$0xf]  ;;  %v1202_v1 = vld [vmem:[%s1191_s22 + $0x4] sm:$0xf]  ;;  %v1205_v2 = vld [vmem:[%s1191_s22 + $0x8] sm:$0xf] }
  0x10   : > { %v1208_v3 = vld [vmem:[%s1191_s22 + $0xc] sm:$0xf]  ;;  %v1211_v4 = vld [vmem:[%s1191_s22 + $0x10] sm:$0x3] }
  0x11 LB: >> { %v966_v5 = vcombine.low %v1211_v4, %v1211_v4  ;;  %vm384_vm0 = vcmask 1041408   ;;  %v965_v6 = vcombine.low %v1205_v2, %v1208_v3  ;;  %s946_s27 = sshll.u32 %s1151_s26, 8  ;;  %v964_v8 = vcombine.low %v1199_v0, %v1202_v1  ;;  %s652_s4 = scalar_lea.vmem [#allocation2], %s1151_s26  ;;  %s1151_s26 = sphi %s1213_s26, %s202_s26  }
  0x12   : >> { %s204_s28 = sshra.s32 %s946_s27, 3  ;;  %vm335_vm1 = vcmask 293888   ;;  %vm581_vm2 = vcmask 261120   ;;  %vm653_vm3 = vcmask 253952   ;;  %s202_s26 = sadd.s32 1, %s1151_s26  }
  0x13   : >> { %1092 = vmatprep.subr.msk.bf16.mxu0 %vm384_vm0, %v966_v5  ;;  %v386_v7 = vsel %vm384_vm0, %v966_v5, 0  ;;  %1093 = vmatprep.subr.msk.bf16.mxu1 %vm384_vm0, %v966_v5  ;;  %s947_s29 = sshll.u32 %s204_s28, 2  ;;  %p199_p4 = scmp.ge.s32.totalorder %s202_s26, 8  }
  0x14   : >> { %1025 = vmatpush3.bf16.msra.mxu0 %v386_v7  ;;  %1089 = vmatpush3.bf16.msra.mxu1 %v386_v7  ;;  %s1226_s30 = scalar_lea.vmem %s1186_s18, %s947_s29  ;;  %vm1154_vm4 = vmmov (%p199_p4), 0   ;;  %v1131_v0 = vld [vmem:[%s1191_s22 + $0x2c] sm:$0xff] (%p199_p4)   ;;  %v1132_v1 = vld [vmem:[%s1191_s22 + $0x24] sm:$0xff] (%p199_p4)   ;;  %v669_v2 = vlaneseq (%p199_p4)  ;;  %v664_v4 = vld [vmem:[%s1191_s22 + $0x34] sm:$0x1] (%p199_p4) }
  0x15   : >> { %1026 = vmatprep.subr.bf16.mxu0 %v965_v6  ;;  %1087 = vmatprep.subr.bf16.mxu1 %v965_v6  ;;  %v1113_v9 = vld [vmem:[%s1226_s30] sm:$0xff]   ;;  %v1114_v10 = vld [vmem:[%s1226_s30 + $0x8] sm:$0xff]   ;;  %v1115_v11 = vld [vmem:[%s1226_s30 + $0x10] sm:$0xff]  }
  0x16   : >> { %1030 = vmatprep.mubr.msk.bf16.mxu0 %vm335_vm1, %v1113_v9  ;;  %v1121_v12 = vld [vmem:[%s1226_s30 + $0x40] sm:$0xff]   ;;  %v1122_v13 = vld [vmem:[%s1226_s30 + $0x48] sm:$0xff]   ;;  %v1123_v14 = vld [vmem:[%s1226_s30 + $0x50] sm:$0xff]   ;;  %v670_v3 = vshrl.u32 (%p199_p4), %v669_v2, 7 }
  0x17   : >> { %1046 = vmatprep.mubr.msk.bf16.mxu1 %vm335_vm1, %v1121_v12  ;;  %v1116_v15 = vld [vmem:[%s1226_s30 + $0x18] sm:$0xff]   ;;  %v1117_v16 = vld [vmem:[%s1226_s30 + $0x20] sm:$0xff]   ;;  %v1118_v19 = vld [vmem:[%s1226_s30 + $0x28] sm:$0xff]  }
  0x18   : >> { %1027 = vmatpush3.bf16.msra.mxu0 %v965_v6  ;;  %1090 = vmatpush3.bf16.msra.mxu1 %v965_v6  ;;  %v1124_v17 = vld [vmem:[%s1226_s30 + $0x58] sm:$0xff]   ;;  %v1125_v18 = vld [vmem:[%s1226_s30 + $0x60] sm:$0xff]   ;;  %v1119_v20 = vld [vmem:[%s1226_s30 + $0x30] sm:$0xff]  }
  0x19   : >> { %1028 = vmatprep.subr.bf16.mxu0 %v964_v8  ;;  %1088 = vmatprep.subr.bf16.mxu1 %v964_v8  ;;  %v1126_v21 = vld [vmem:[%s1226_s30 + $0x68] sm:$0xff]   ;;  %v1127_v22 = vld [vmem:[%s1226_s30 + $0x70] sm:$0xff]   ;;  %v1120_v23 = vld [vmem:[%s1226_s30 + $0x38] sm:$0xff]  }
  0x1a   : >> { %v1128_v24 = vld [vmem:[%s1226_s30 + $0x78] sm:$0xff]  }
  0x1c   : >> { %1029 = vmatpush3.bf16.msra.mxu0 %v964_v8  ;;  %1091 = vmatpush3.bf16.msra.mxu1 %v964_v8 }
  0x1f   : >> { %1031 = vmatmul.mubr.msk.bf16.vlgmr.msra.gmra.mxu0 %vm335_vm1, %v1114_v10  ;;  %1047 = vmatmul.mubr.msk.bf16.vlgmr.msra.gmra.mxu1 %vm335_vm1, %v1122_v13 }
  0x20   : >> { %1034 = vmatprep.mubr.msk.bf16.mxu0 %vm335_vm1, %v1115_v11  ;;  %1050 = vmatprep.mubr.msk.bf16.mxu1 %vm335_vm1, %v1123_v14 }
  0x27   : >> { %1035 = vmatmul.mubr.msk.bf16.gmra.mxu0 %vm335_vm1, %v1116_v15  ;;  %1051 = vmatmul.mubr.msk.bf16.gmra.mxu1 %vm335_vm1, %v1124_v17 }
  0x28   : >> { %1038 = vmatprep.mubr.msk.bf16.mxu0 %vm335_vm1, %v1117_v16  ;;  %1054 = vmatprep.mubr.msk.bf16.mxu1 %vm335_vm1, %v1125_v18 }
  0x2f   : >> { %1039 = vmatmul.mubr.msk.bf16.gmra.mxu0 %vm335_vm1, %v1118_v19  ;;  %1055 = vmatmul.mubr.msk.bf16.gmra.mxu1 %vm335_vm1, %v1126_v21 }
  0x30   : >> { %1042 = vmatprep.mubr.msk.bf16.mxu0 %vm335_vm1, %v1119_v20  ;;  %1058 = vmatprep.mubr.msk.bf16.mxu1 %vm335_vm1, %v1127_v22 }
  0x37   : >> { %1043 = vmatmul.mubr.msk.bf16.gmra.mxu0 %vm335_vm1, %v1120_v23  ;;  %1059 = vmatmul.mubr.msk.bf16.gmra.mxu1 %vm335_vm1, %v1128_v24 }
  0xdf   : >> { %v1032_v25 = vpop.f32.mrf.mxu0  ;;  %v1260_v27 = vpop.f32.mrf.mxu1 }
  0xe0   : >> { %v551_v32 = vmax.f32 %v1032_v25, 0.0 }
  0xe1   : >> { %v422_v26 = vpop.f32.mrf.mxu0  ;;  %v1262_v30 = vpop.f32.mrf.mxu1 }
  0xe2   : >> { %v549_v29 = vmax.f32 %v422_v26, 0.0  ;;  %v585_v42 = vsel %vm581_vm2, %v551_v32, 0.0 }
  0xe3   : >> { %v1033_v28 = vpop.f32.mrf.mxu0  ;;  %v1264_v34 = vpop.f32.mrf.mxu1 }
  0xe4   : >> { %v582_v36 = vsel %vm581_vm2, %v549_v29, 0.0  ;;  %v552_v37 = vmax.f32 %v1033_v28, 0.0 }
  0xe5   : >> { %v425_v31 = vpop.f32.mrf.mxu0  ;;  %v1268_v41 = vpop.f32.mrf.mxu1 }
  0xe6   : >> { %v550_v33 = vmax.f32 %v425_v31, 0.0  ;;  %v587_v46 = vsel %vm581_vm2, %v552_v37, 0.0 }
  0xe7   : >> { %v1036_v35 = vpop.f32.mrf.mxu0  ;;  %v1272_v49 = vpop.f32.mrf.mxu1 }
  0xe8   : >> { %v583_v38 = vsel %vm581_vm2, %v550_v33, 0.0  ;;  %v555_v50 = vmax.f32 %v1036_v35, 0.0 }
  0xe9   : >> { %v584_v39 = vadd.f32 %v583_v38, %v582_v36  ;;  %v438_v40 = vpop.f32.mrf.mxu0  ;;  %v502_v59 = vpop.f32.mrf.mxu1 }
  0xea   : >> { %v553_v43 = vmax.f32 %v438_v40, 0.0  ;;  %v593_v60 = vsel %vm581_vm2, %v555_v50, 0.0  ;;  %v568_v50 = vmax.f32 %v1264_v34, 0.0 }
  0xeb   : >> { %v586_v44 = vadd.f32 %v585_v42, %v584_v39  ;;  %v1037_v45 = vpop.f32.mrf.mxu0  ;;  %v1053_v8 = vpop.f32.mrf.mxu1  ;;  %v565_v39 = vmax.f32 %v1262_v30, 0.0 }
  0xec   : >> { %v589_v51 = vsel %vm581_vm2, %v553_v43, 0.0  ;;  %v556_v55 = vmax.f32 %v1037_v45, 0.0  ;;  %v566_v43 = vmax.f32 %v1268_v41, 0.0 }
  0xed   : >> { %v588_v47 = vadd.f32 %v587_v46, %v586_v44  ;;  %v441_v48 = vpop.f32.mrf.mxu0  ;;  %v505_v18 = vpop.f32.mrf.mxu1  ;;  %v567_v46 = vmax.f32 %v1260_v27, 0.0  ;;  %v571_v27 = vmax.f32 %v1272_v49, 0.0 }
  0xee   : >> { %v554_v52 = vmax.f32 %v441_v48, 0.0  ;;  %v595_v5 = vsel %vm581_vm2, %v556_v55, 0.0  ;;  %v570_v41 = vmax.f32 %v505_v18, 0.0 }
  0xef   : >> { %v590_v53 = vadd.f32 %v589_v51, %v588_v47  ;;  %v1040_v54 = vpop.f32.mrf.mxu0  ;;  %v1056_v26 = vpop.f32.mrf.mxu1  ;;  %v613_v47 = vsel %vm581_vm2, %v565_v39, 0.0  ;;  %v615_v51 = vsel %vm581_vm2, %v566_v43, 0.0  ;;  %v617_v30 = vsel %vm581_vm2, %v567_v46, 0.0 }
  0xf0   : >> { %v591_v56 = vsel %vm581_vm2, %v554_v52, 0.0  ;;  %v559_v9 = vmax.f32 %v1040_v54, 0.0  ;;  %v569_v54 = vmax.f32 %v502_v59, 0.0  ;;  %v623_v34 = vsel %vm581_vm2, %v570_v41, 0.0 }
  0xf1   : >> { %v592_v57 = vadd.f32 %v591_v56, %v590_v53  ;;  %v454_v58 = vpop.f32.mrf.mxu0  ;;  %v518_v37 = vpop.f32.mrf.mxu1  ;;  %v619_v56 = vsel %vm581_vm2, %v568_v50, 0.0  ;;  %v1153_v46 = vmov (%p199_p4), 0.0  }
  0xf2   : >> { %v557_v61 = vmax.f32 %v454_v58, 0.0  ;;  %v601_v19 = vsel %vm581_vm2, %v559_v9, 0.0  ;;  %1062 = vmatprep.subr.bf16.mxu0 (%p199_p4), %v1153_v46  ;;  %1070 = vmatprep.subr.bf16.mxu1 (%p199_p4), %v1153_v46 }
  0xf3   : >> { %v594_v62 = vadd.f32 %v593_v60, %v592_v57  ;;  %v1041_v63 = vpop.f32.mrf.mxu0  ;;  %v1057_v45 = vpop.f32.mrf.mxu1  ;;  %v621_v60 = vsel %vm581_vm2, %v569_v54, 0.0  ;;  %1066 = vmatprep.mubr.msk.bf16.mxu0 (%p199_p4), %vm1154_vm4, %v1153_v46  ;;  %1074 = vmatprep.mubr.msk.bf16.mxu1 (%p199_p4), %vm1154_vm4, %v1153_v46 }
  0xf4   : >> { %v597_v10 = vsel %vm581_vm2, %v557_v61, 0.0  ;;  %v560_v14 = vmax.f32 %v1041_v63, 0.0  ;;  %1071 = vmatpush3.bf16.msra.mxu1 (%p199_p4), %v1131_v0 }
  0xf5   : >> { %v596_v6 = vadd.f32 %v595_v5, %v594_v62  ;;  %v457_v7 = vpop.f32.mrf.mxu0  ;;  %v521_v53 = vpop.f32.mrf.mxu1  ;;  %v572_v62 = vmax.f32 %v1053_v8, 0.0  ;;  %1072 = vmatprep.subr.bf16.mxu1 (%p199_p4), %v1153_v46 }
  0xf6   : >> { %v558_v11 = vmax.f32 %v457_v7, 0.0  ;;  %v603_v23 = vsel %vm581_vm2, %v560_v14, 0.0  ;;  %v573_v7 = vmax.f32 %v518_v37, 0.0 }
  0xf7   : >> { %v598_v12 = vadd.f32 %v597_v10, %v596_v6  ;;  %v1044_v13 = vpop.f32.mrf.mxu0  ;;  %v1060_v58 = vpop.f32.mrf.mxu1  ;;  %v625_v6 = vsel %vm581_vm2, %v571_v27, 0.0  ;;  %v627_v9 = vsel %vm581_vm2, %v572_v62, 0.0  ;;  %v574_v10 = vmax.f32 %v521_v53, 0.0  ;;  %v666_v27 = vld [vmem:[%s1191_s22 + $0x38] sm:$0x1] (%p199_p4) }
  0xf8   : >> { %v599_v15 = vsel %vm581_vm2, %v558_v11, 0.0  ;;  %v563_v28 = vmax.f32 %v1044_v13, 0.0  ;;  %v575_v13 = vmax.f32 %v1056_v26, 0.0  ;;  %v629_v49 = vsel %vm581_vm2, %v573_v7, 0.0  ;;  %1073 = vmatpush3.bf16.msra.mxu1 (%p199_p4), %v1132_v1 }
  0xf9   : >> { %v600_v16 = vadd.f32 %v599_v15, %v598_v12  ;;  %v470_v17 = vpop.f32.mrf.mxu0  ;;  %v534_v5 = vpop.f32.mrf.mxu1  ;;  %v576_v15 = vmax.f32 %v1057_v45, 0.0  ;;  %v631_v8 = vsel %vm581_vm2, %v574_v10, 0.0  ;;  %v1129_v45 = vld [vmem:[%s1191_s22 + $0x1c] sm:$0xff] (%p199_p4)  }
  0xfa   : >> { %v561_v20 = vmax.f32 %v470_v17, 0.0  ;;  %v609_v38 = vsel %vm581_vm2, %v563_v28, 0.0  ;;  %v633_v18 = vsel %vm581_vm2, %v575_v13, 0.0  ;;  %1063 = vmatpush3.bf16.msra.mxu0 (%p199_p4), %v1129_v45  ;;  %v1134_v10 = vld [vmem:[%s1335_s2] sm:$0xff] (%p199_p4)  }
  0xfb   : >> { %v602_v21 = vadd.f32 %v601_v19, %v600_v16  ;;  %v1045_v22 = vpop.f32.mrf.mxu0  ;;  %v1061_v12 = vpop.f32.mrf.mxu1  ;;  %v577_v19 = vmax.f32 %v534_v5, 0.0  ;;  %1064 = vmatprep.subr.bf16.mxu0 (%p199_p4), %v1153_v46 }
  0xfc   : >> { %v605_v29 = vsel %vm581_vm2, %v561_v20, 0.0  ;;  %v564_v33 = vmax.f32 %v1045_v22, 0.0  ;;  %v580_v28 = vmax.f32 %v1061_v12, 0.0 }
  0xfd   : >> { %v604_v24 = vadd.f32 %v603_v23, %v602_v21  ;;  %v473_v25 = vpop.f32.mrf.mxu0  ;;  %v537_v17 = vpop.f32.mrf.mxu1  ;;  %v635_v21 = vsel %vm581_vm2, %v576_v15, 0.0 }
  0xfe   : >> { %v562_v31 = vmax.f32 %v473_v25, 0.0  ;;  %v611_v42 = vsel %vm581_vm2, %v564_v33, 0.0  ;;  %v578_v22 = vmax.f32 %v537_v17, 0.0  ;;  %v637_v25 = vsel %vm581_vm2, %v577_v19, 0.0 }
  0xff   : >> { %v606_v32 = vadd.f32 %v605_v29, %v604_v24  ;;  %v579_v24 = vmax.f32 %v1060_v58, 0.0 }
 0x100   : >> { %v607_v35 = vsel %vm581_vm2, %v562_v31, 0.0  ;;  %v639_v29 = vsel %vm581_vm2, %v578_v22, 0.0 }
 0x101   : >> { %v608_v36 = vadd.f32 %v607_v35, %v606_v32  ;;  %v641_v32 = vsel %vm581_vm2, %v579_v24, 0.0  ;;  %v643_v35 = vsel %vm581_vm2, %v580_v28, 0.0 }
 0x103   : >> { %v610_v40 = vadd.f32 %v609_v38, %v608_v36 }
 0x105   : >> { %v612_v44 = vadd.f32 %v611_v42, %v610_v40 }
 0x107   : >> { %v614_v48 = vadd.f32 %v613_v47, %v612_v44  ;;  %v1130_v47 = vld [vmem:[%s1191_s22 + $0x14] sm:$0xff] (%p199_p4)  }
 0x108   : > { %1065 = vmatpush3.bf16.msra.mxu0 (%p199_p4), %v1130_v47 }
 0x109   : >> { %v616_v52 = vadd.f32 %v615_v51, %v614_v48  ;;  %1078 = vmatprep.subr.bf16.mxu0 (%p199_p4), %v1153_v46  ;;  %v665_v51 = vunpack.c.l.bf16 (%p199_p4), %v664_v4 }
 0x10b   : >> { %v618_v55 = vadd.f32 %v617_v30, %v616_v52  ;;  %v671_v52 = vsub.s32 (%p199_p4), 0, %v670_v3 }
 0x10d   : >> { %v620_v57 = vadd.f32 %v619_v56, %v618_v55  ;;  %v672_v53 = vrot.slane (%p199_p4), %v665_v51, %v671_v52 }
 0x10f   : >> { %v622_v61 = vadd.f32 %v621_v60, %v620_v57  ;;  %v667_v60 = vunpack.c.l.bf16 (%p199_p4), %v666_v27 }
 0x111   : >> { %v624_v63 = vadd.f32 %v623_v34, %v622_v61  ;;  %v734_v61 = vrot.slane (%p199_p4), %v667_v60, %v671_v52 }
 0x113   : >> { %v626_v59 = vadd.f32 %v625_v6, %v624_v63 }
 0x115   : >> { %v628_v11 = vadd.f32 %v627_v9, %v626_v59  ;;  %v1133_v9 = vld [vmem:[%s1335_s2 + $0x8] sm:$0xff] (%p199_p4)  }
 0x117   : >> { %v630_v14 = vadd.f32 %v629_v49, %v628_v11 }
 0x119   : >> { %v632_v16 = vadd.f32 %v631_v8, %v630_v14 }
 0x11b   : >> { %v634_v20 = vadd.f32 %v633_v18, %v632_v16 }
 0x11d   : >> { %v636_v23 = vadd.f32 %v635_v21, %v634_v20 }
 0x11f   : >> { %v638_v26 = vadd.f32 %v637_v25, %v636_v23 }
 0x121   : >> { %v640_v31 = vadd.f32 %v639_v29, %v638_v26 }
 0x123   : >> { %v642_v33 = vadd.f32 %v641_v32, %v640_v31 }
 0x125   : >> { %v644_v36 = vadd.f32 %v643_v35, %v642_v33 }
 0x127   : >> { %v645_v37 = vrot.slane %v644_v36, 4 }
 0x129   : >> { %v646_v38 = vadd.f32 %v645_v37, %v644_v36 }
 0x12b   : >> { %v647_v39 = vrot.slane %v646_v38, 2 }
 0x12d   : >> { %v648_v40 = vadd.f32 %v647_v39, %v646_v38 }
 0x12f   : >> { %v649_v42 = vrot.slane %v648_v40, 1 }
 0x131   : >> { %v650_v43 = vadd.f32 %v649_v42, %v648_v40  ;;  %201 = sbr.rel (!%p199_p4) target bundleno = 17 (0x11), region = 74 }
 0x133   : >> { %v651_v44 = vmul.f32 0.00390625, %v650_v43 }
 0x135   : >> { %654 = vst.msk [vmem:[%s652_s4] sm:$0x1] %vm653_vm3, %v651_v44 }
 0x13c   : > { %v655_v48 = vld [vmem:[#allocation2] sm:$0xff] }
 0x13d   : > { %v668_v50 = vpack.c.bf16 %v655_v48, %v655_v48 }
 0x13f   : > { %1067 = vmatmul.mubr.msk.bf16.vlgmr.msra.gmra.mxu0 %vm581_vm2, %v668_v50 }
 0x140   : > { %1082 = vmatprep.mubr.msk.bf16.mxu0 %vm1154_vm4, %v1153_v46  ;;  %1079 = vmatpush3.bf16.msra.mxu0 %v1133_v9 }
 0x141   : > { %1080 = vmatprep.subr.bf16.mxu0 %v1153_v46 }
 0x144   : > { %1081 = vmatpush3.bf16.msra.mxu0 %v1134_v10 }
 0x1ff   : > { %v723_v30 = vpop.f32.mrf.mxu0 }
 0x200   : > { %v724_v54 = vadd.f32 %v723_v30, %v672_v53 }
 0x201   : > { %v1068_v55 = vpop.f32.mrf.mxu0 }
 0x202   : > { %v729_v56 = vmax.f32 %v724_v54, 0.0 }
 0x203   : > { %v726_v41 = vpop.f32.mrf.mxu0 }
 0x204   : > { %v730_v57 = vpack.c.bf16 %v729_v56, %v729_v56 }
 0x205   : > { %v1069_v58 = vpop.f32.mrf.mxu0 }
 0x206   : > { %1075 = vmatmul.mubr.msk.bf16.vlgmr.msra.gmra.mxu1 %vm581_vm2, %v730_v57 }
 0x2c6   : > { %v784_v62 = vpop.f32.mrf.mxu1 }
 0x2c7   : > { %v785_v34 = vadd.f32 %v784_v62, %v734_v61 }
 0x2c8   : > { %v1076_v63 = vpop.f32.mrf.mxu1 }
 0x2c9   : > { %v790_v5 = vmul.f32 %v785_v34, %v785_v34 }
 0x2ca   : > { %v787_v6 = vpop.f32.mrf.mxu1 }
 0x2cb   : > { %v791_v7 = vsel %vm581_vm2, %v790_v5, 0.0 }
 0x2cc   : > { %v1077_v59 = vpop.f32.mrf.mxu1  ;;  %792 = vadd.xlane.f32.xlu0 %v791_v7 }
 0x355   : > { %v793_v11 = vpop.xlane.xlu0 %792 }
 0x356   : > { %v794_v12 = vmax.f32 %v793_v11, 1e-24 }
 0x358   : > { %1135 = vrsqrt.f32 %v794_v12 }
 0x365   : > { %v1136_v13 = vpop.eup %1135 }
 0x366   : > { %v796_v49 = vmul.f32 %v1136_v13, %v785_v34 }
 0x368   : > { %v797_v14 = vpack.c.bf16 %v796_v49, %v796_v49  ;;  %v858_v15 = vsel %vm581_vm2, %v796_v49, 0.0 }
 0x369   : > { %860 = vst [vmem:[%s1196_s25 + $0x8] sm:$0xff] %v858_v15 }
 0x36a   : > { %1083 = vmatmul.mubr.msk.bf16.vlgmr.msra.gmra.mxu0 %vm581_vm2, %v797_v14 }
 0x42a   : > { %v851_v8 = vpop.f32.mrf.mxu0 }
 0x42b   : > { %v857_v16 = vmul.f32 14.285714, %v851_v8 }
 0x42c   : > { %v1084_v17 = vpop.f32.mrf.mxu0 }
 0x42d   : > { %859 = vst [vmem:[%s1196_s25] sm:$0xff] %v857_v16 }
 0x42e   : > { %v854_v18 = vpop.f32.mrf.mxu0 }
 0x430   : > { %v1085_v19 = vpop.f32.mrf.mxu0 }
 0x431 PF: > { %s13_s12 = sadd.s32 1, %s1147_s12  }
 0x432   : > { %p10_p5 = scmp.ge.s32.totalorder %s13_s12, 4  }
 0x434   :  { %12 = sbr.rel (!%p10_p5) target bundleno = 1 (0x1), region = 85 }

</bundles_post_ra>
